<compile_context>
chip_gen: v7x
topology: tpu7x:2x2x1
jax: 0.10.0
libtpu: 0.0.40
codegen_flags: <defaults>
</compile_context>

<pallas_src>
import math

import jax
import jax.numpy as jnp
from jax.experimental import pallas as pl
from jax.experimental.pallas import tpu as pltpu


def _round_up(x, m):
    return (x + m - 1) // m * m


def _conv1x1(x, w, b, vpu_path):
    """x: (Cin, S) f32, w: (Cout, Cin) f32, b: (Cout, 1) f32 -> (Cout, S) f32."""
    if vpu_path:
        cin = x.shape[0]
        key = w[:, 0:1] * x[0:1, :] + b
        for c in range(1, cin):
            key = key + w[:, c:c + 1] * x[c:c + 1, :]
        return key
    return jnp.dot(w, x, preferred_element_type=jnp.float32) + b


# ----------------------------------------------------------------------------
# Kernel 1: get_norm_key  == 1x1 conv (per-pixel matmul) + bias + L2 norm over C
# ----------------------------------------------------------------------------
def _make_norm_key_kernel(vpu_path):
    def kernel(x_ref, w_ref, b_ref, o_ref):
        key = _conv1x1(x_ref[0], w_ref[...], b_ref[...], vpu_path)
        inv = jax.lax.rsqrt(jnp.sum(key * key, axis=0, keepdims=True))  # EUP
        o_ref[0] = key * inv
    return kernel


def get_norm_key(x, weight, bias):
    """x: (B, Cin, H, W); weight: (Cout, Cin, 1, 1); bias: (Cout,)."""
    B, Cin, H, W = x.shape
    Cout = weight.shape[0]
    S = H * W
    S_pad = _round_up(S, 128)

    x_flat = x.reshape(B, Cin, S).astype(jnp.float32)
    if S_pad != S:
        x_flat = jnp.pad(x_flat, ((0, 0), (0, 0), (0, S_pad - S)))
    w2 = weight.reshape(Cout, Cin).astype(jnp.float32)
    b2 = bias.reshape(Cout, 1).astype(jnp.float32)

    out = pl.pallas_call(
        _make_norm_key_kernel(Cin <= 8),
        out_shape=jax.ShapeDtypeStruct((B, Cout, S_pad), jnp.float32),
        grid_spec=pltpu.PrefetchScalarGridSpec(
            num_scalar_prefetch=0,
            grid=(B,),
            in_specs=[
                pl.BlockSpec((1, Cin, S_pad), lambda b: (b, 0, 0)),
                pl.BlockSpec((Cout, Cin), lambda b: (0, 0)),
                pl.BlockSpec((Cout, 1), lambda b: (0, 0)),
            ],
            out_specs=pl.BlockSpec((1, Cout, S_pad), lambda b: (b, 0, 0)),
        ),
        compiler_params=pltpu.CompilerParams(dimension_semantics=("parallel",)),
    )(x_flat, w2, b2)
    return out[:, :, :S].reshape(B, Cout, H, W)


# ----------------------------------------------------------------------------
# Kernel 2: fused get_norm_key + Matcher.forward, tiled over the template axis
# ----------------------------------------------------------------------------
def _make_matcher_kernel(T, S_pad, S_real, n_tiles, vpu_conv):
    needs_mask = S_real != S_pad

    def kernel(x_ref, w_ref, b_ref, tmpl_ref, coarse_ref, sds_ref, o_ref,
               key_sc, acc_sc):
        t = pl.program_id(1)

        # ---- per-batch init: fused 1x1 conv + L2 normalize + accumulator ----
        @pl.when(t == 0)
        def _():
            key = _conv1x1(x_ref[0], w_ref[...], b_ref[...], vpu_conv)
            inv = jax.lax.rsqrt(jnp.sum(key * key, axis=0, keepdims=True))
            key_sc[...] = (key * inv).astype(key_sc.dtype)
            acc_sc[...] = jnp.full(acc_sc.shape, -jnp.inf, dtype=acc_sc.dtype)

        key_bf = key_sc[...]                                   # (C, S_pad) bf16

        # ---- one fused MXU dot for all four fine templates of this tile ----
        tmpl = tmpl_ref[0].reshape(4 * T, -1)                  # (4T, C) bf16
        scores = jnp.dot(tmpl, key_bf,
                         preferred_element_type=jnp.float32)   # (4T, S_pad) f32
        scores = scores.reshape(4, T, S_pad)
        sds_t = sds_ref[0].astype(jnp.float32)                 # (T, S_pad)

        g = scores[0:2]                                        # global bg/fg
        l = scores[2:4] * sds_t[None, :, :]                    # local bg/fg

        if needs_mask:
            rows = jax.lax.broadcasted_iota(jnp.int32, (1, T, 1), 1) + t * T
            valid = rows < S_real
            g = jnp.where(valid, g, -jnp.inf)
            l = jnp.where(valid, l, -jnp.inf)

        tile_max = jnp.concatenate(
            [jnp.max(g, axis=1), jnp.max(l, axis=1)], axis=0)  # (4, S_pad)
        acc_sc[...] = jnp.maximum(acc_sc[...], tile_max)

        # ---- finalize: coarse scores + one lane-dense (10, S_pad) store ----
        @pl.when(t == n_tiles - 1)
        def _():
            coarse_scores = jnp.dot(coarse_ref[0], key_bf,
                                    preferred_element_type=jnp.float32)  # (6, S_pad)
            o_ref[0] = jnp.concatenate([acc_sc[...], coarse_scores], axis=0)

    return kernel


def matcher_forward(x, conv_w, conv_b, state, sds):
    """Fused Matcher.get_norm_key + Matcher.forward.

    x: (B, Cin, H, W); conv_w: (Cout, Cin, 1, 1); conv_b: (Cout,);
    state: dict as in the PyTorch module; sds: (B, H*W, H, W).
    Returns (B, 10, H, W) float32.
    """
    B, Cin, H, W = x.shape
    Cout = conv_w.shape[0]
    S = H * W
    S_pad = _round_up(S, 128)
    T = 128                          # template-axis tile (always divides S_pad)
    n_tiles = S_pad // T
    pad_s = S_pad - S

    x_flat = x.reshape(B, Cin, S).astype(jnp.float32)
    if pad_s:
        x_flat = jnp.pad(x_flat, ((0, 0), (0, 0), (0, pad_s)))
    w2 = conv_w.reshape(Cout, Cin).astype(jnp.float32)
    b2 = conv_b.reshape(Cout, 1).astype(jnp.float32)

    # Fine templates stacked (B, 4, S_pad, C): [global bg, global fg, local bg,
    # local fg], streamed in bf16.
    fine = jnp.stack([state['global'][0], state['global'][1],
                      state['local'][0], state['local'][1]], axis=1)
    if pad_s:
        fine = jnp.pad(fine, ((0, 0), (0, 0), (0, pad_s), (0, 0)))
    fine = fine.astype(jnp.bfloat16)

    # Coarse templates stacked (B, 6, C): overall / short-term / long-term bg,fg.
    coarse = jnp.concatenate(
        [state['overall'][0], state['overall'][1],
         state['short-term'][0], state['short-term'][1],
         state['long-term'][0], state['long-term'][1]],
        axis=1).astype(jnp.bfloat16)

    sds_flat = sds.reshape(B, S, S)
    if pad_s:
        sds_flat = jnp.pad(sds_flat, ((0, 0), (0, pad_s), (0, pad_s)))
    sds_flat = sds_flat.astype(jnp.bfloat16)

    kernel = _make_matcher_kernel(T, S_pad, S, n_tiles, Cin <= 8)

    out = pl.pallas_call(
        kernel,
        out_shape=jax.ShapeDtypeStruct((B, 10, S_pad), jnp.float32),
        grid_spec=pltpu.PrefetchScalarGridSpec(
            num_scalar_prefetch=0,
            grid=(B, n_tiles),                # reduction (template) axis last
            in_specs=[
                pl.BlockSpec((1, Cin, S_pad), lambda b, t: (b, 0, 0)),
                pl.BlockSpec((Cout, Cin), lambda b, t: (0, 0)),
                pl.BlockSpec((Cout, 1), lambda b, t: (0, 0)),
                pl.BlockSpec((1, 4, T, Cout), lambda b, t: (b, 0, t, 0)),
                pl.BlockSpec((1, 6, Cout), lambda b, t: (b, 0, 0)),
                pl.BlockSpec((1, T, S_pad), lambda b, t: (b, t, 0)),
            ],
            out_specs=pl.BlockSpec((1, 10, S_pad), lambda b, t: (b, 0, 0)),
            scratch_shapes=[
                pltpu.VMEM((Cout, S_pad), jnp.bfloat16),  # cached normalized key
                pltpu.VMEM((4, S_pad), jnp.float32),      # running-max accumulator
            ],
        ),
        compiler_params=pltpu.CompilerParams(
            dimension_semantics=("parallel", "arbitrary"),
            vmem_limit_bytes=48 * 1024 * 1024,   # safe under v7x's 64 MiB VMEM
        ),
    )(x_flat, w2, b2, fine, coarse, sds_flat)

    return out[:, :, :S].reshape(B, 10, H, W)


# ----------------------------------------------------------------------------
# Pure-JAX references (for correctness check)
# ----------------------------------------------------------------------------
def _ref_norm_key(x, weight, bias):
    B, Cin, H, W = x.shape
    Cout = weight.shape[0]
    key = jnp.einsum('oc,bchw->bohw', weight.reshape(Cout, Cin), x) \
        + bias.reshape(1, Cout, 1, 1)
    return key / jnp.linalg.norm(key, axis=1, keepdims=True)


def _ref_forward(norm_key, state, sds):
    B, C, H, W = norm_key.shape
    S = H * W
    key = norm_key.reshape(B, C, S)
    bmm = lambda a: jnp.einsum('bnc,bcs->bns', a, key)
    sdsf = sds.reshape(B, S, S)
    g_bg = jnp.max(bmm(state['global'][0]), axis=1, keepdims=True)
    g_fg = jnp.max(bmm(state['global'][1]), axis=1, keepdims=True)
    l_bg = jnp.max(bmm(state['local'][0]) * sdsf, axis=1, keepdims=True)
    l_fg = jnp.max(bmm(state['local'][1]) * sdsf, axis=1, keepdims=True)
    o_bg, o_fg = bmm(state['overall'][0]), bmm(state['overall'][1])
    s_bg, s_fg = bmm(state['short-term'][0]), bmm(state['short-term'][1])
    lt_bg, lt_fg = bmm(state['long-term'][0]), bmm(state['long-term'][1])
    out = jnp.concatenate([g_bg, g_fg, l_bg, l_fg, o_bg, o_fg,
                           s_bg, s_fg, lt_bg, lt_fg], axis=1)
    return out.reshape(B, 10, H, W)


# ----------------------------------------------------------------------------
if __name__ == "__main__":
    B, in_c, out_c, H, W = 2, 4, 32, 16, 16
    S = H * W
    key0 = jax.random.PRNGKey(0)
    ks = jax.random.split(key0, 12)

    # Deterministic parameter init (kaiming_uniform-like for the 1x1 conv).
    fan_in = in_c
    bound = math.sqrt(2.0) * math.sqrt(3.0 / fan_in)
    conv_w = jax.random.uniform(ks[0], (out_c, in_c, 1, 1), jnp.float32,
                                -bound, bound)
    conv_b = jnp.zeros((out_c,), jnp.float32)
    # TODO(synk): 'short'/'long' parameters and update_state/build_*_template are
    # state-maintenance only (not part of forward) and are not kernelized here.

    # Example inputs.
    x = jax.random.normal(ks[1], (B, in_c, H, W), jnp.float32)
    sds = jax.random.uniform(ks[2], (B, S, H, W), jnp.float32)

    def unit(v, axis):
        return v / jnp.linalg.norm(v, axis=axis, keepdims=True)

    state = {
        'global': [unit(jax.random.normal(ks[3], (B, S, out_c)), 2),
                   unit(jax.random.normal(ks[4], (B, S, out_c)), 2)],
        'local': [jax.random.normal(ks[5], (B, S, out_c)),
                  jax.random.normal(ks[6], (B, S, out_c))],
        'overall': [unit(jax.random.normal(ks[7], (B, 1, out_c)), 2),
                    unit(jax.random.normal(ks[8], (B, 1, out_c)), 2)],
        'short-term': [unit(jax.random.normal(ks[9], (B, 1, out_c)), 2),
                       unit(jax.random.normal(ks[10], (B, 1, out_c)), 2)],
        'long-term': [unit(jax.random.normal(ks[11], (B, 1, out_c)), 2),
                      unit(jax.random.normal(ks[0], (B, 1, out_c)), 2)],
    }

    # Pallas path: standalone norm-key kernel + fused (conv+normalize+match) kernel.
    norm_key = get_norm_key(x, conv_w, conv_b)
    out = matcher_forward(x, conv_w, conv_b, state, sds)
    out = jax.block_until_ready(out)
    norm_key = jax.block_until_ready(norm_key)

    # Reference check.
    nk_ref = _ref_norm_key(x, conv_w, conv_b)
    out_ref = _ref_forward(nk_ref, state, sds)
    assert out.shape == (B, 10, H, W)
    assert jnp.allclose(norm_key, nk_ref, rtol=1e-4, atol=1e-4)
    # sds / templates / cached key are streamed in bf16 -> loosened tolerance.
    assert jnp.allclose(out, out_ref, rtol=2e-2, atol=3e-2)

    print("KERNEL_OK")
</pallas_src>

<mosaic_0001>
module attributes {stable_mosaic.version = 11 : i64} {
  func.func @kernel(%arg0: i32, %arg1: memref<1x4x256xf32, #tpu.memory_space<vmem>>, %arg2: memref<32x4xf32, #tpu.memory_space<vmem>>, %arg3: memref<32x1xf32, #tpu.memory_space<vmem>>, %arg4: memref<1x32x256xf32, #tpu.memory_space<vmem>>) attributes {dimension_semantics = [#tpu.dimension_semantics<parallel>], iteration_bounds = array<i64: 2>, scalar_prefetch = 0 : i64, scratch_operands = 0 : i64, tpu.core_type = #tpu.core_type<tc>, window_params = [{transform_indices = @transform_0, window_bounds = array<i64: 1, 4, 256>}, {pipeline_mode = #tpu.pipeline_mode<synchronous>, transform_indices = @transform_1, window_bounds = array<i64: 32, 4>}, {pipeline_mode = #tpu.pipeline_mode<synchronous>, transform_indices = @transform_2, window_bounds = array<i64: 32, 1>}, {transform_indices = @transform_3, window_bounds = array<i64: 1, 32, 256>}]} {
    %c0 = arith.constant 0 : index
    %c0_0 = arith.constant 0 : index
    %c0_1 = arith.constant 0 : index
    %0 = vector.load %arg1[%c0, %c0_0, %c0_1] : memref<1x4x256xf32, #tpu.memory_space<vmem>>, vector<1x4x256xf32>
    %1 = vector.shape_cast %0 : vector<1x4x256xf32> to vector<4x256xf32>
    %c0_2 = arith.constant 0 : index
    %c0_3 = arith.constant 0 : index
    %2 = vector.load %arg2[%c0_2, %c0_3] : memref<32x4xf32, #tpu.memory_space<vmem>>, vector<32x4xf32>
    %c0_4 = arith.constant 0 : index
    %c0_5 = arith.constant 0 : index
    %3 = vector.load %arg3[%c0_4, %c0_5] : memref<32x1xf32, #tpu.memory_space<vmem>>, vector<32x1xf32>
    %4 = vector.extract_strided_slice %2 {offsets = [0, 0], sizes = [32, 1], strides = [1, 1]} : vector<32x4xf32> to vector<32x1xf32>
    %5 = vector.extract_strided_slice %1 {offsets = [0, 0], sizes = [1, 256], strides = [1, 1]} : vector<4x256xf32> to vector<1x256xf32>
    %6 = vector.broadcast %4 : vector<32x1xf32> to vector<32x256xf32>
    %7 = vector.broadcast %5 : vector<1x256xf32> to vector<32x256xf32>
    %8 = arith.mulf %6, %7 : vector<32x256xf32>
    %9 = vector.broadcast %3 : vector<32x1xf32> to vector<32x256xf32>
    %10 = arith.addf %8, %9 : vector<32x256xf32>
    %11 = vector.extract_strided_slice %2 {offsets = [0, 1], sizes = [32, 1], strides = [1, 1]} : vector<32x4xf32> to vector<32x1xf32>
    %12 = vector.extract_strided_slice %1 {offsets = [1, 0], sizes = [1, 256], strides = [1, 1]} : vector<4x256xf32> to vector<1x256xf32>
    %13 = vector.broadcast %11 : vector<32x1xf32> to vector<32x256xf32>
    %14 = vector.broadcast %12 : vector<1x256xf32> to vector<32x256xf32>
    %15 = arith.mulf %13, %14 : vector<32x256xf32>
    %16 = arith.addf %10, %15 : vector<32x256xf32>
    %17 = vector.extract_strided_slice %2 {offsets = [0, 2], sizes = [32, 1], strides = [1, 1]} : vector<32x4xf32> to vector<32x1xf32>
    %18 = vector.extract_strided_slice %1 {offsets = [2, 0], sizes = [1, 256], strides = [1, 1]} : vector<4x256xf32> to vector<1x256xf32>
    %19 = vector.broadcast %17 : vector<32x1xf32> to vector<32x256xf32>
    %20 = vector.broadcast %18 : vector<1x256xf32> to vector<32x256xf32>
    %21 = arith.mulf %19, %20 : vector<32x256xf32>
    %22 = arith.addf %16, %21 : vector<32x256xf32>
    %23 = vector.extract_strided_slice %2 {offsets = [0, 3], sizes = [32, 1], strides = [1, 1]} : vector<32x4xf32> to vector<32x1xf32>
    %24 = vector.extract_strided_slice %1 {offsets = [3, 0], sizes = [1, 256], strides = [1, 1]} : vector<4x256xf32> to vector<1x256xf32>
    %25 = vector.broadcast %23 : vector<32x1xf32> to vector<32x256xf32>
    %26 = vector.broadcast %24 : vector<1x256xf32> to vector<32x256xf32>
    %27 = arith.mulf %25, %26 : vector<32x256xf32>
    %28 = arith.addf %22, %27 : vector<32x256xf32>
    %29 = arith.mulf %28, %28 : vector<32x256xf32>
    %cst = arith.constant dense<0.000000e+00> : vector<256xf32>
    %30 = vector.multi_reduction <add>, %29, %cst [0] : vector<32x256xf32> to vector<256xf32>
    %31 = vector.shape_cast %30 : vector<256xf32> to vector<1x256xf32>
    %32 = math.rsqrt %31 : vector<1x256xf32>
    %33 = vector.broadcast %32 : vector<1x256xf32> to vector<32x256xf32>
    %34 = arith.mulf %28, %33 : vector<32x256xf32>
    %c0_6 = arith.constant 0 : index
    %c0_7 = arith.constant 0 : index
    %c0_8 = arith.constant 0 : index
    %35 = vector.load %arg4[%c0_6, %c0_7, %c0_8] : memref<1x32x256xf32, #tpu.memory_space<vmem>>, vector<1x32x256xf32>
    %36 = vector.shape_cast %35 : vector<1x32x256xf32> to vector<32x256xf32>
    %37 = vector.shape_cast %34 : vector<32x256xf32> to vector<1x32x256xf32>
    tpu.vector_store %arg4[%c0_6, %c0_7, %c0_8], %37 {strides = array<i32>} : memref<1x32x256xf32, #tpu.memory_space<vmem>>, vector<1x32x256xf32>,
    return
  }
  func.func @transform_0(%arg0: i32) -> (i32, i32, i32) {
    %c0_i32 = arith.constant 0 : i32
    %c0_i32_0 = arith.constant 0 : i32
    %c0_i32_1 = arith.constant 0 : i32
    return %arg0, %c0_i32, %c0_i32_0 : i32, i32, i32
  }
  func.func @transform_1(%arg0: i32) -> (i32, i32) {
    %c0_i32 = arith.constant 0 : i32
    %c0_i32_0 = arith.constant 0 : i32
    %c0_i32_1 = arith.constant 0 : i32
    return %c0_i32, %c0_i32_0 : i32, i32
  }
  func.func @transform_2(%arg0: i32) -> (i32, i32) {
    %c0_i32 = arith.constant 0 : i32
    %c0_i32_0 = arith.constant 0 : i32
    %c0_i32_1 = arith.constant 0 : i32
    return %c0_i32, %c0_i32_0 : i32, i32
  }
  func.func @transform_3(%arg0: i32) -> (i32, i32, i32) {
    %c0_i32 = arith.constant 0 : i32
    %c0_i32_0 = arith.constant 0 : i32
    %c0_i32_1 = arith.constant 0 : i32
    return %arg0, %c0_i32, %c0_i32_0 : i32, i32, i32
  }
}

</mosaic_0001>

<bundles_post_ra>
// kernel: tpu_custom_call.1
= control target key start
LH: loop header
LB: loop body
LE: loop exit
PB: predicated region body
PF: predicated region fallthrough
CT: control target
= control target key end

     0   :  { %8 = vsyncpa [#allocation3], 0  ;;  %s817_s0 = inlined_call_operand.vmem [shape: f32[2,4,256], index: 0, kind: input, shape index: {}]   ;;  %s818_s1 = inlined_call_operand.vmem [shape: f32[32,4], index: 1, kind: input, shape index: {}]   ;;  %s819_s2 = inlined_call_operand.vmem [shape: f32[32,1], index: 2, kind: input, shape index: {}]   ;;  %s820_s3 = inlined_call_operand.hbm [shape: f32[2,32,256], index: 3, kind: output, shape index: {}]  }
   0x1   :  { %10 = vsyncpa [#allocation3 + $0x1], 0  ;;  %s690_s12 = smov 0   ;;  %s692_s13 = smov 0  }
   0x2   :  { %s694_s14 = smov 0   ;;  %s696_s15 = smov 0  }
   0x3 LB: > { %s711_s16 = sadd.s32 4294967295, %s661_s15   ;;  %s523_s17 = sadd.s32 4294967294, %s661_s15   ;;  %s661_s15 = sphi %s696_s15, %s826_s15   ;;  %s657_s14 = sphi %s694_s14, %s825_s14   ;;  %s653_s13 = sphi %s692_s13, %s824_s13   ;;  %s649_s12 = sphi %s690_s12, %s823_s12  }
   0x4   : > { %s715_s18 = sadd.s32 1, %s661_s15   ;;  %s91_s19 = sadd.s32 1, %s657_s14 }
   0x5   : > { %s88_s20 = ssub.s32 %s661_s15, %s715_s18  ;;  %p101_p0 = scmp.ne.s32.totalorder %s657_s14, %s653_s13 }
   0x6   : > { %p89_p1 = scmp.eq.s32.totalorder %s88_s20, 0  ;;  %p102_p2 = scmp.eq.s32.totalorder %s711_s16, 1 }
   0x7   : > { %p107_p3 = scmp.ne.s32.totalorder %s653_s13, %s649_s12  ;;  %p108_p4 = scmp.eq.s32.totalorder %s523_s17, 1 }
   0x8   : > { %s726_s21 = scalar_select %p89_p1, %s657_s14, %s91_s19  }
   0x9   : > { %p728_p5 = por %p102_p2, %p101_p0  ;;  %p732_p6 = por %p108_p4, %p107_p3 }
   0xa   : > { %p526_p7 = scmp.ge.s32.totalorder %s661_s15, 1  ;;  %p140_p8 = scmp.lt.s32.totalorder %s661_s15, 3 }
   0xc   : > { %p141_p9 = pnand %p526_p7, %p140_p8 }
   0xd   : > { %v172_v0 = vld [vmem:[%s818_s1 + $0x10] sm:$0xff] (!%p141_p9)  ;;  %v170_v1 = vld [vmem:[%s818_s1] sm:$0xff] (!%p141_p9)  ;;  %v663_v2 = vmov (!%p141_p9), 0   ;;  %v171_v4 = vld [vmem:[%s818_s1 + $0x8] sm:$0xff] (!%p141_p9)  ;;  %v664_v6 = vmov (!%p141_p9), 1   ;;  %v665_v9 = vmov (!%p141_p9), 2   ;;  %v199_v18 = vlaneseq (!%p141_p9) }
   0xe   : > { %144 = sbr.rel (%p141_p9) target bundleno = 244 (0xf4), region = 32  ;;  %583 = vset.pattern.permute.xlu1 (!%p141_p9), %v663_v2  ;;  %582 = vset.pattern.permute.xlu0 (!%p141_p9), %v663_v2  ;;  %v174_v3 = vld [vmem:[%s819_s2] sm:$0xff] (!%p141_p9)  ;;  %v175_v5 = vld [vmem:[%s819_s2 + $0x8] sm:$0xff] (!%p141_p9)  ;;  %v173_v7 = vld [vmem:[%s818_s1 + $0x18] sm:$0xff] (!%p141_p9)  ;;  %v666_v11 = vmov (!%p141_p9), 3   ;;  %p164_p10 = scmp.lt.s32.totalorder (!%p141_p9), %s711_s16, 1 }
   0xf   : > { %190 = vperm.xlu1 (!%p141_p9), %583, %v172_v0   ;;  %180 = vperm.xlu0 (!%p141_p9), %582, %v170_v1   ;;  %v176_v8 = vld [vmem:[%s819_s2 + $0x10] sm:$0xff] (!%p141_p9)  ;;  %v177_v10 = vld [vmem:[%s819_s2 + $0x18] sm:$0xff] (!%p141_p9)  ;;  %v200_v21 = vshrl.u32 (!%p141_p9), %v199_v18, 7  ;;  %s161_s27 = sand.u32 (!%p141_p9), 1, %s653_s13   ;;  %s536_s29 = sshll.u32 (!%p141_p9), %s711_s16, 10 }
  0x10   : > { %s527_s28 = sshll.u32 (!%p141_p9), %s161_s27, 6  ;;  %s772_s7 = scalar_lea.hbm (!%p141_p9), %s820_s3, %s536_s29 }
  0x11   : > { %v201_v23 = vsub.s32 (!%p141_p9), 0, %v200_v21  ;;  %v205_v24 = vsub.s32 (!%p141_p9), 4, %v200_v21  ;;  %v271_v26 = vsub.s32 (!%p141_p9), 1, %v200_v21  ;;  %v275_v27 = vsub.s32 (!%p141_p9), 5, %v200_v21  ;;  %s163_s30 = scalar_lea.vmem (!%p141_p9), [#allocation2], %s527_s28  ;;  %s667_s9 = smov (!%p141_p9), [#allocation2]  }
  0x12   : > { %v321_v34 = vsub.s32 (!%p141_p9), 2, %v200_v21  ;;  %v325_v35 = vsub.s32 (!%p141_p9), 6, %v200_v21  ;;  %v371_v40 = vsub.s32 (!%p141_p9), 3, %v200_v21  ;;  %v375_v41 = vsub.s32 (!%p141_p9), 7, %v200_v21  ;;  %s461_s4 = sshll.u32 (!%p141_p9), %s163_s30, 4  ;;  %s603_s10 = sshll.u32 (!%p141_p9), %s667_s9, 4  ;;  %s774_s4 = int_to_ptr.vmem [resolvable:$true] %s461_s4  ;;  %s604_s10 = int_to_ptr.vmem [resolvable:$false] %s603_s10 }
  0x13   : > { %227 = vperm.xlu1 (!%p141_p9), %583, %v174_v3   ;;  %185 = vperm.xlu0 (!%p141_p9), %582, %v171_v4   ;;  %s599_s8 = scalar_lea.vmem (!%p141_p9), %s774_s4, 1024  ;;  %s605_s11 = scalar_lea.vmem (!%p141_p9), %s604_s10, 2048 }
  0x14   : > { %p600_p11 = scmp.ne.s32.totalorder (!%p141_p9), %s774_s4, %s599_s8  ;;  %p606_p0 = scmp.lt.s32.totalorder (!%p141_p9), %s774_s4, %s604_s10 }
  0x15   : > { %s165_s19 = scalar_select %p164_p10, %s711_s16, 1 }
  0x16   : > { %s776_s16 = scalar_lea.sflag [#allocation3], %s161_s27  ;;  %p601_p12 = pnand %p600_p11, %p728_p5 }
  0x17   : > { %584 = vset.pattern.permute.xlu1 %v664_v6  ;;  %232 = vperm.xlu0 %582, %v175_v5   ;;  %s535_s20 = sshll.u32 %s165_s19, 3  ;;  %p607_p1 = scmp.lt.s32.totalorder %s605_s11, %s599_s8 }
  0x18   : > { %254 = vperm.xlu1 %584, %v170_v1   ;;  %s168_s26 = scalar_lea.vmem %s817_s0, %s535_s20  ;;  %p602_p13 = pneg %p601_p12 }
  0x19   : > { %v169_v25 = vld [vmem:[%s168_s26] sm:$0xff]  ;;  %p608_p2 = por %p607_p1, %p606_p0 }
  0x1a   : > { %v202_v30 = vrot.slane %v169_v25, %v201_v23  ;;  %v206_v31 = vrot.slane %v169_v25, %v205_v24  ;;  %v272_v32 = vrot.slane %v169_v25, %v271_v26  ;;  %v276_v33 = vrot.slane %v169_v25, %v275_v27 }
  0x1b   : > { %585 = vset.pattern.permute.xlu0 %v664_v6  ;;  %v322_v46 = vrot.slane %v169_v25, %v321_v34  ;;  %v326_v47 = vrot.slane %v169_v25, %v325_v35  ;;  %v372_v50 = vrot.slane %v169_v25, %v371_v40  ;;  %v376_v51 = vrot.slane %v169_v25, %v375_v41  ;;  %p609_p3 = pnand %p608_p2, %p602_p13 }
  0x1c   : > { %586 = vset.pattern.permute.xlu1 %v663_v2  ;;  %258 = vperm.xlu0 %585, %v171_v4   ;;  %v212_v37 = vrot.slane %v202_v30, %v201_v23  ;;  %v216_v38 = vrot.slane %v206_v31, %v201_v23  ;;  %v282_v42 = vrot.slane %v272_v32, %v271_v26 }
  0x1d   : > { %195 = vperm.xlu1 %586, %v173_v7   ;;  %v286_v43 = vrot.slane %v276_v33, %v271_v26  ;;  %v332_v58 = vrot.slane %v322_v46, %v321_v34  ;;  %v336_v59 = vrot.slane %v326_v47, %v321_v34 }
  0x20   : > { %262 = vperm.xlu0 %585, %v172_v0  }
  0x21   : > { %237 = vperm.xlu1 %586, %v176_v8  }
  0x24   : > { %588 = vset.pattern.permute.xlu0 %v665_v9 }
  0x25   : > { %587 = vset.pattern.permute.xlu1 %v665_v9  ;;  %308 = vperm.xlu0 %588, %v171_v4  }
  0x26   : > { %304 = vperm.xlu1 %587, %v170_v1  }
  0x29   : > { %312 = vperm.xlu0 %588, %v172_v0  }
  0x2a   : > { %589 = vset.pattern.permute.xlu1 %v663_v2 }
  0x2b   : > { %242 = vperm.xlu1 %589, %v177_v10  }
  0x2d   : > { %592 = vset.pattern.permute.xlu0 %v666_v11 }
  0x2e   : > { %358 = vperm.xlu0 %592, %v171_v4  }
  0x2f   : > { %590 = vset.pattern.permute.xlu1 %v664_v6 }
  0x30   : > { %266 = vperm.xlu1 %590, %v173_v7  }
  0x32   : > { %366 = vperm.xlu0 %592, %v173_v7  }
  0x34   : > { %591 = vset.pattern.permute.xlu1 %v666_v11 }
  0x35   : > { %354 = vperm.xlu1 %591, %v170_v1   ;;  %v386_v1 = vrot.slane %v376_v51, %v371_v40 }
  0x39   : > { %593 = vset.pattern.permute.xlu1 %v665_v9 }
  0x3a   : > { %316 = vperm.xlu1 %593, %v173_v7  }
  0x3e   : > { %594 = vset.pattern.permute.xlu1 %v666_v11 }
  0x3f   : > { %362 = vperm.xlu1 %594, %v172_v0   ;;  %v382_v0 = vrot.slane %v372_v50, %v371_v40 }
  0x8e   : > { %v191_v12 = vpop.permute.xlu1 %190  ;;  %v181_v13 = vpop.permute.xlu0 %180 }
  0x8f   : > { %v217_v44 = vmul.f32 %v212_v37, %v181_v13  ;;  %v218_v45 = vmul.f32 %v216_v38, %v181_v13  ;;  %v221_v2 = vmul.f32 %v212_v37, %v191_v12  ;;  %v222_v3 = vmul.f32 %v216_v38, %v191_v12 }
  0x92   : > { %v228_v14 = vpop.permute.xlu1 %227  ;;  %v186_v15 = vpop.permute.xlu0 %185 }
  0x93   : > { %v219_v48 = vmul.f32 %v212_v37, %v186_v15  ;;  %v220_v49 = vmul.f32 %v216_v38, %v186_v15  ;;  %v245_v56 = vadd.f32 %v228_v14, %v217_v44  ;;  %v246_v57 = vadd.f32 %v228_v14, %v218_v45 }
  0x96   : > { %v233_v17 = vpop.permute.xlu0 %232 }
  0x97   : > { %v255_v16 = vpop.permute.xlu1 %254  ;;  %v247_v60 = vadd.f32 %v233_v17, %v219_v48  ;;  %v248_v61 = vadd.f32 %v233_v17, %v220_v49 }
  0x98   : > { %v287_v52 = vmul.f32 %v282_v42, %v255_v16  ;;  %v288_v53 = vmul.f32 %v286_v43, %v255_v16 }
  0x9a   : > { %v295_v4 = vadd.f32 %v287_v52, %v245_v56  ;;  %v296_v5 = vadd.f32 %v288_v53, %v246_v57 }
  0x9b   : > { %v259_v20 = vpop.permute.xlu0 %258 }
  0x9c   : > { %v196_v19 = vpop.permute.xlu1 %195  ;;  %v289_v62 = vmul.f32 %v282_v42, %v259_v20  ;;  %v290_v63 = vmul.f32 %v286_v43, %v259_v20 }
  0x9d   : > { %v223_v6 = vmul.f32 %v212_v37, %v196_v19  ;;  %v224_v7 = vmul.f32 %v216_v38, %v196_v19 }
  0x9e   : > { %v297_v11 = vadd.f32 %v289_v62, %v247_v60  ;;  %v298_v13 = vadd.f32 %v290_v63, %v248_v61 }
  0x9f   : > { %v263_v28 = vpop.permute.xlu0 %262 }
  0xa0   : > { %v238_v22 = vpop.permute.xlu1 %237  ;;  %v291_v21 = vmul.f32 %v282_v42, %v263_v28  ;;  %v292_v20 = vmul.f32 %v286_v43, %v263_v28 }
  0xa1   : > { %v249_v18 = vadd.f32 %v238_v22, %v221_v2  ;;  %v250_v17 = vadd.f32 %v238_v22, %v222_v3 }
  0xa3   : > { %v300_v44 = vadd.f32 %v292_v20, %v250_v17 }
  0xa4   : > { %v309_v36 = vpop.permute.xlu0 %308 }
  0xa5   : > { %v305_v29 = vpop.permute.xlu1 %304  ;;  %v339_v8 = vmul.f32 %v332_v58, %v309_v36  ;;  %v340_v9 = vmul.f32 %v336_v59, %v309_v36 }
  0xa6   : > { %v337_v14 = vmul.f32 %v332_v58, %v305_v29  ;;  %v338_v15 = vmul.f32 %v336_v59, %v305_v29 }
  0xa7   : > { %v347_v26 = vadd.f32 %v339_v8, %v297_v11  ;;  %v348_v27 = vadd.f32 %v340_v9, %v298_v13 }
  0xa8   : > { %v313_v54 = vpop.permute.xlu0 %312  ;;  %v345_v31 = vadd.f32 %v337_v14, %v295_v4  ;;  %v346_v32 = vadd.f32 %v338_v15, %v296_v5 }
  0xa9   : > { %v341_v36 = vmul.f32 %v332_v58, %v313_v54  ;;  %v342_v29 = vmul.f32 %v336_v59, %v313_v54 }
  0xaa   : > { %v243_v39 = vpop.permute.xlu1 %242 }
  0xab   : > { %v251_v33 = vadd.f32 %v243_v39, %v223_v6  ;;  %v252_v34 = vadd.f32 %v243_v39, %v224_v7  ;;  %v350_v39 = vadd.f32 %v342_v29, %v300_v44 }
  0xad   : > { %v359_v16 = vpop.permute.xlu0 %358 }
  0xae   : > { %v389_v30 = vmul.f32 %v382_v0, %v359_v16  ;;  %v390_v19 = vmul.f32 %v386_v1, %v359_v16 }
  0xaf   : > { %v267_v55 = vpop.permute.xlu1 %266 }
  0xb0   : > { %v293_v23 = vmul.f32 %v282_v42, %v267_v55  ;;  %v294_v24 = vmul.f32 %v286_v43, %v267_v55  ;;  %v299_v43 = vadd.f32 %v291_v21, %v249_v18  ;;  %v397_v45 = vadd.f32 %v389_v30, %v347_v26 }
  0xb1   : > { %v367_v22 = vpop.permute.xlu0 %366  ;;  %v398_v46 = vadd.f32 %v390_v19, %v348_v27 }
  0xb2   : > { %v301_v40 = vadd.f32 %v293_v23, %v251_v33  ;;  %v302_v28 = vadd.f32 %v294_v24, %v252_v34  ;;  %v393_v49 = vmul.f32 %v382_v0, %v367_v22  ;;  %v394_v50 = vmul.f32 %v386_v1, %v367_v22 }
  0xb3   : > { %v349_v51 = vadd.f32 %v341_v36, %v299_v43  ;;  %v405_v57 = vmul.f32 %v397_v45, %v397_v45 }
  0xb4   : > { %v355_v10 = vpop.permute.xlu1 %354 }
  0xb5   : > { %v387_v25 = vmul.f32 %v382_v0, %v355_v10  ;;  %v388_v12 = vmul.f32 %v386_v1, %v355_v10 }
  0xb7   : > { %v395_v41 = vadd.f32 %v387_v25, %v345_v31  ;;  %v396_v42 = vadd.f32 %v388_v12, %v346_v32 }
  0xb9   : > { %v317_v35 = vpop.permute.xlu1 %316  ;;  %v403_v53 = vmul.f32 %v395_v41, %v395_v41  ;;  %v404_v54 = vmul.f32 %v396_v42, %v396_v42 }
  0xba   : > { %v343_v37 = vmul.f32 %v332_v58, %v317_v35  ;;  %v344_v38 = vmul.f32 %v336_v59, %v317_v35  ;;  %v406_v58 = vmul.f32 %v398_v46, %v398_v46 }
  0xbb   : > { %v411_v63 = vadd.f32 %v405_v57, %v403_v53 }
  0xbc   : > { %v351_v47 = vadd.f32 %v343_v37, %v301_v40  ;;  %v352_v48 = vadd.f32 %v344_v38, %v302_v28  ;;  %v420_v2 = vadd.f32 %v406_v58, %v404_v54 }
  0xbe   : > { %v363_v52 = vpop.permute.xlu1 %362  ;;  %v401_v59 = vadd.f32 %v393_v49, %v351_v47  ;;  %v402_v60 = vadd.f32 %v394_v50, %v352_v48 }
  0xbf   : > { %v391_v55 = vmul.f32 %v382_v0, %v363_v52  ;;  %v392_v56 = vmul.f32 %v386_v1, %v363_v52 }
  0xc0   : > { %v409_v5 = vmul.f32 %v401_v59, %v401_v59  ;;  %v410_v6 = vmul.f32 %v402_v60, %v402_v60 }
  0xc1   : > { %v399_v61 = vadd.f32 %v391_v55, %v349_v51  ;;  %v400_v62 = vadd.f32 %v392_v56, %v350_v39 }
  0xc3   : > { %v407_v3 = vmul.f32 %v399_v61, %v399_v61  ;;  %v408_v4 = vmul.f32 %v400_v62, %v400_v62 }
  0xc5   : > { %v412_v7 = vadd.f32 %v411_v63, %v407_v3  ;;  %v421_v8 = vadd.f32 %v420_v2, %v408_v4 }
  0xc7   : > { %v413_v9 = vadd.f32 %v412_v7, %v409_v5  ;;  %v422_v10 = vadd.f32 %v421_v8, %v410_v6 }
  0xc9   : > { %v414_v11 = vrot.slane %v413_v9, 4  ;;  %v423_v0 = vrot.slane %v422_v10, 4 }
  0xcb   : > { %v415_v1 = vadd.f32 %v414_v11, %v413_v9  ;;  %v424_v13 = vadd.f32 %v423_v0, %v422_v10 }
  0xcd   : > { %v416_v14 = vrot.slane %v415_v1, 2  ;;  %v425_v15 = vrot.slane %v424_v13, 2 }
  0xcf   : > { %v417_v16 = vadd.f32 %v416_v14, %v415_v1  ;;  %v426_v18 = vadd.f32 %v425_v15, %v424_v13 }
  0xd1   : > { %v418_v17 = vrot.slane %v417_v16, 1  ;;  %v427_v21 = vrot.slane %v426_v18, 1 }
  0xd3   : > { %v419_v20 = vadd.f32 %v418_v17, %v417_v16  ;;  %v428_v23 = vadd.f32 %v427_v21, %v426_v18 }
  0xd5   : > { %595 = vrsqrt.f32 %v419_v20 }
  0xd6   : > { %597 = vrsqrt.f32 %v428_v23 }
  0xdf   : > { %v596_v24 = vpop.eup %595 }
  0xe0   : > { %v598_v25 = vpop.eup %597  ;;  %v435_v12 = vmul.f32 %v596_v24, %v399_v61  ;;  %v431_v26 = vmul.f32 %v596_v24, %v395_v41  ;;  %v433_v27 = vmul.f32 %v596_v24, %v397_v45  ;;  %v437_v30 = vmul.f32 %v596_v24, %v401_v59 }
  0xe1   : > { %v436_v19 = vmul.f32 %v598_v25, %v400_v62  ;;  %v432_v31 = vmul.f32 %v598_v25, %v396_v42  ;;  %v434_v32 = vmul.f32 %v598_v25, %v398_v46  ;;  %v438_v33 = vmul.f32 %v598_v25, %v402_v60 }
  0xe2   : > { %443 = vst [vmem:[%s163_s30 + $0x20] sm:$0xff] %v435_v12  ;;  %439 = vst [vmem:[%s163_s30] sm:$0xff] %v431_v26 }
  0xe3   : > { %441 = vst [vmem:[%s163_s30 + $0x10] sm:$0xff] %v433_v27  ;;  %445 = vst [vmem:[%s163_s30 + $0x30] sm:$0xff] %v437_v30 }
  0xe4   : > { %444 = vst [vmem:[%s163_s30 + $0x28] sm:$0xff] %v436_v19  ;;  %440 = vst [vmem:[%s163_s30 + $0x8] sm:$0xff] %v432_v31 }
  0xe5   : > { %442 = vst [vmem:[%s163_s30 + $0x18] sm:$0xff] %v434_v32  ;;  %446 = vst [vmem:[%s163_s30 + $0x38] sm:$0xff] %v438_v33 }
  0xe6   : > { %612 = shalt.err (!%p609_p3)
}
  0xe7   : > { %s613_s17 = scalar_lea.hbm %s772_s7, 1024  ;;  %s617_s24 = scalar_lea.hbm %s820_s3, 2048 }
  0xe8   : > { %p614_p4 = scmp.ne.s32.totalorder %s772_s7, %s613_s17  ;;  %p618_p9 = scmp.lt.u32.totalorder %s772_s7, %s820_s3 }
  0xe9   : > { %p619_p10 = scmp.lt.u32.totalorder %s617_s24, %s613_s17  ;;  %p621_p12 = scmp.lt.u32.totalorder %s613_s17, %s772_s7 }
  0xea   : > { %p615_p7 = pnand %p614_p4, %p728_p5 }
  0xeb   : > { %p620_p11 = por %p619_p10, %p618_p9 }
  0xec   : > { %p616_p8 = pneg %p615_p7 }
  0xed   : > { %p622_p13 = por %p621_p12, %p620_p11 }
  0xef   : > { %p623_p0 = pnand %p622_p13, %p616_p8 }
  0xf1   : > { %626 = shalt.err (!%p623_p0)
}
  0xf2   : > { %s668_s27 = smov 256   ;;  %s669_s28 = smov 16  }
  0xf3   : > { %537 = dma.vmem_to_hbm [thread:$0]  (%p728_p5), %s774_s4, 1024, %s772_s7, %s776_s16, %s668_s27, %s668_s27, %s669_s28  }
  0xf4 PF: > { %p543_p1 = scmp.ge.s32.totalorder %s661_s15, 2  ;;  %s476_s29 = sand.u32 1, %s649_s12  }
  0xf5   : > { %s477_s30 = scalar_lea.sflag [#allocation3], %s476_s29 }
  0xf6   : > { %p540_p2 = pnand %p543_p1, %p732_p6 }
  0xf8   : > { %644 = dma.done.wait (!%p540_p2), %s477_s30, 1024  }
  0xf9   : > { %646 = vsyncadd (!%p540_p2), %s477_s30, 4294966272  ;;  %p13_p3 = scmp.ge.s32.totalorder %s715_s18, 4   ;;  %s823_s12 = smov %s653_s13 }
  0xfa   : > { %s824_s13 = smov %s657_s14  ;;  %s825_s14 = smov %s726_s21 }
  0xfb   : > { %s826_s15 = smov %s715_s18  ;;  %15 = sbr.rel (!%p13_p3) target bundleno = 3 (0x3), region = 67 }
 0x102   :  { %482 = vsyncpa [#allocation3], 1 }
 0x103   :  { %484 = vsyncpa [#allocation3 + $0x1], 1 }

</bundles_post_ra>
